<compile_context>
chip_gen: v6e
topology: v6e:2x2x1
jax: 0.10.0
libtpu: 0.0.40
codegen_flags: <defaults>
</compile_context>

<pallas_src>
import jax
import jax.numpy as jnp
from jax.experimental import pallas as pl
from jax.experimental.pallas import tpu as pltpu

HID_SIZE = 100
INPUT_SIZE = 2
NUM_CLASSES = 3

HID_PAD = 128   # hidden dim padded to one full lane width (MXU K dim)
OUT_ROWS = 8    # classes padded 3 -> 8 so the result tile is a clean sublane group
SUB_B = 4096    # in-kernel compute chunk (batch columns); keeps h ~2 MiB live


def _round_up(n, m):
    return ((n + m - 1) // m) * m


def _mlp_kernel(xt_ref, w1t_ref, b1t_ref, wct_ref, bct_ref, out_ref):
    # xt_ref : (2, tb)     transposed input block (batch along lanes)
    # w1t_ref: (128, 2)    layer-1 weights, transposed, hidden padded to 128
    # b1t_ref: (128, 1)
    # wct_ref: (8, 128)    collapsed layers 2-4, transposed + zero-padded
    # bct_ref: (8, 1)
    # out_ref: (8, tb)     transposed logits block (lane-dense stores)
    tb = out_ref.shape[1]

    w1c0 = w1t_ref[:, 0:1]          # (128, 1)
    w1c1 = w1t_ref[:, 1:2]          # (128, 1)
    b1 = b1t_ref[...]               # (128, 1)
    wct = wct_ref[...]              # (8, 128)
    bct = bct_ref[...]              # (8, 1)

    # Statically chunk the (possibly large) batch tile: big DMA tiles for
    # pipelining, small live hidden intermediate for VMEM/vreg pressure.
    c = 0
    while c < tb:
        n = min(SUB_B, tb - c)                               # multiple of 128
        x0 = xt_ref[0:1, c:c + n]                            # (1, n)
        x1 = xt_ref[1:2, c:c + n]                            # (1, n)
        # Layer 1 (K=2) on the VPU: broadcast FMAs + bias + ReLU.
        h = jnp.maximum(w1c0 * x0 + w1c1 * x1 + b1, 0.0)     # (128, n)
        # Collapsed layers 2-4 on the MXU (K=128), f32 accumulation.
        out = jnp.dot(wct, h, preferred_element_type=jnp.float32) + bct  # (8, n)
        out_ref[:, c:c + n] = out.astype(out_ref.dtype)
        c += n


def prepare_params(params):
    """Collapse layers 2-4 and build transposed, zero-padded weight layouts."""
    (w1, b1), (w2, b2), (w3, b3), (w4, b4) = params
    wc = w2 @ w3 @ w4                              # [100, 3]
    bc = b2 @ w3 @ w4 + b3 @ w4 + b4               # [1, 3]

    w1t = jnp.zeros((HID_PAD, INPUT_SIZE), jnp.float32).at[:HID_SIZE, :].set(w1.T)
    b1t = jnp.zeros((HID_PAD, 1), jnp.float32).at[:HID_SIZE, :].set(b1.T)
    wct = jnp.zeros((OUT_ROWS, HID_PAD), jnp.float32).at[:NUM_CLASSES, :HID_SIZE].set(wc.T)
    bct = jnp.zeros((OUT_ROWS, 1), jnp.float32).at[:NUM_CLASSES, :].set(bc.T)
    # Padded hidden rows get b1 = 0 -> h_pad = relu(0) = 0, and Wc^T's padded
    # columns are zero, so padding never leaks into the real logits.
    return w1t, b1t, wct, bct


def predict_model_forward(x, prepared, *, tile_b=32768):
    """x: [B, INPUT_SIZE] float -> [B, NUM_CLASSES] float32 logits."""
    w1t, b1t, wct, bct = prepared
    x = x.astype(jnp.float32)
    B = x.shape[0]

    # ---- batch tiling ------------------------------------------------------
    Bp0 = _round_up(B, 128)                    # lane-aligned batch
    g = max(1, pl.cdiv(Bp0, tile_b))           # number of grid tiles
    if g == 1 and Bp0 >= 8192:
        g = 2                                  # give both v7x TensorCores work
    tb = _round_up(pl.cdiv(Bp0, g), 128)       # tile size (multiple of 128 lanes)
    Bp = tb * g                                # small padding (< 128*g rows)

    # Transposed, zero-padded input [2, Bp]: batch along lanes -> contiguous DMA.
    xt = jnp.zeros((INPUT_SIZE, Bp), jnp.float32).at[:, :B].set(x.T)

    out_t = pl.pallas_call(
        _mlp_kernel,
        out_shape=jax.ShapeDtypeStruct((OUT_ROWS, Bp), jnp.float32),
        grid=(g,),
        in_specs=[
            pl.BlockSpec((INPUT_SIZE, tb), lambda i: (0, i)),        # x^T : batch-tiled
            pl.BlockSpec((HID_PAD, INPUT_SIZE), lambda i: (0, 0)),   # w1^T: resident
            pl.BlockSpec((HID_PAD, 1), lambda i: (0, 0)),            # b1^T: resident
            pl.BlockSpec((OUT_ROWS, HID_PAD), lambda i: (0, 0)),     # Wc^T: resident
            pl.BlockSpec((OUT_ROWS, 1), lambda i: (0, 0)),           # bc^T: resident
        ],
        out_specs=pl.BlockSpec((OUT_ROWS, tb), lambda i: (0, i)),
        compiler_params=pltpu.CompilerParams(
            dimension_semantics=("parallel",),          # megacore-shard batch tiles
            vmem_limit_bytes=48 * 1024 * 1024,
        ),
    )(xt, w1t, b1t, wct, bct)

    # Drop class/batch padding, return row-major [B, NUM_CLASSES] (cheap: 12 B/row).
    return out_t[:NUM_CLASSES, :B].T


def init_params(key):
    """Deterministic init mimicking nn.Linear's uniform(-1/sqrt(fan_in), +)."""
    def linear(key, fan_in, fan_out):
        kw, kb = jax.random.split(key)
        bound = 1.0 / jnp.sqrt(fan_in)
        w = jax.random.uniform(kw, (fan_in, fan_out), jnp.float32, -bound, bound)
        b = jax.random.uniform(kb, (1, fan_out), jnp.float32, -bound, bound)
        return w, b

    k1, k2, k3, k4 = jax.random.split(key, 4)
    return (
        linear(k1, INPUT_SIZE, HID_SIZE),
        linear(k2, HID_SIZE, HID_SIZE),
        linear(k3, HID_SIZE, HID_SIZE),
        linear(k4, HID_SIZE, NUM_CLASSES),
    )


def reference_forward(x, params):
    (w1, b1), (w2, b2), (w3, b3), (w4, b4) = params
    h = jnp.maximum(x @ w1 + b1, 0.0)
    mid = h @ w2 + b2
    amid = mid @ w3 + b3
    return amid @ w4 + b4


if __name__ == "__main__":
    key = jax.random.PRNGKey(0)
    kx, kp = jax.random.split(key)

    B = 8
    x = jax.random.normal(kx, (B, INPUT_SIZE), jnp.float32)
    params = init_params(kp)
    prepared = prepare_params(params)

    out = predict_model_forward(x, prepared)
    out = jax.block_until_ready(out)

    ref = reference_forward(x, params)
    assert out.shape == (B, NUM_CLASSES)
    assert jnp.allclose(out, ref, atol=1e-4, rtol=1e-4)

    print("KERNEL_OK")
</pallas_src>

<mosaic_0001>
module attributes {stable_mosaic.version = 11 : i64} {
  func.func @_mlp_kernel(%arg0: i32, %arg1: memref<2x128xf32, #tpu.memory_space<vmem>>, %arg2: memref<128x2xf32, #tpu.memory_space<vmem>>, %arg3: memref<128x1xf32, #tpu.memory_space<vmem>>, %arg4: memref<8x128xf32, #tpu.memory_space<vmem>>, %arg5: memref<8x1xf32, #tpu.memory_space<vmem>>, %arg6: memref<8x128xf32, #tpu.memory_space<vmem>>) attributes {dimension_semantics = [#tpu.dimension_semantics<parallel>], iteration_bounds = array<i64: 1>, scalar_prefetch = 0 : i64, scratch_operands = 0 : i64, tpu.core_type = #tpu.core_type<tc>, window_params = [{transform_indices = @transform_0, window_bounds = array<i64: 2, 128>}, {pipeline_mode = #tpu.pipeline_mode<synchronous>, transform_indices = @transform_1, window_bounds = array<i64: 128, 2>}, {pipeline_mode = #tpu.pipeline_mode<synchronous>, transform_indices = @transform_2, window_bounds = array<i64: 128, 1>}, {pipeline_mode = #tpu.pipeline_mode<synchronous>, transform_indices = @transform_3, window_bounds = array<i64: 8, 128>}, {pipeline_mode = #tpu.pipeline_mode<synchronous>, transform_indices = @transform_4, window_bounds = array<i64: 8, 1>}, {transform_indices = @transform_5, window_bounds = array<i64: 8, 128>}]} {
    %c0 = arith.constant 0 : index
    %c0_0 = arith.constant 0 : index
    %0 = vector.load %arg2[%c0, %c0_0] : memref<128x2xf32, #tpu.memory_space<vmem>>, vector<128x1xf32>
    %c0_1 = arith.constant 0 : index
    %c1 = arith.constant 1 : index
    %1 = vector.load %arg2[%c0_1, %c1] : memref<128x2xf32, #tpu.memory_space<vmem>>, vector<128x1xf32>
    %c0_2 = arith.constant 0 : index
    %c0_3 = arith.constant 0 : index
    %2 = vector.load %arg3[%c0_2, %c0_3] : memref<128x1xf32, #tpu.memory_space<vmem>>, vector<128x1xf32>
    %c0_4 = arith.constant 0 : index
    %c0_5 = arith.constant 0 : index
    %3 = vector.load %arg4[%c0_4, %c0_5] : memref<8x128xf32, #tpu.memory_space<vmem>>, vector<8x128xf32>
    %c0_6 = arith.constant 0 : index
    %c0_7 = arith.constant 0 : index
    %4 = vector.load %arg5[%c0_6, %c0_7] : memref<8x1xf32, #tpu.memory_space<vmem>>, vector<8x1xf32>
    %c0_8 = arith.constant 0 : index
    %c0_9 = arith.constant 0 : index
    %5 = vector.load %arg1[%c0_8, %c0_9] : memref<2x128xf32, #tpu.memory_space<vmem>>, vector<1x128xf32>
    %c1_10 = arith.constant 1 : index
    %c0_11 = arith.constant 0 : index
    %6 = vector.load %arg1[%c1_10, %c0_11] : memref<2x128xf32, #tpu.memory_space<vmem>>, vector<1x128xf32>
    %7 = vector.broadcast %0 : vector<128x1xf32> to vector<128x128xf32>
    %8 = vector.broadcast %5 : vector<1x128xf32> to vector<128x128xf32>
    %9 = arith.mulf %7, %8 : vector<128x128xf32>
    %10 = vector.broadcast %1 : vector<128x1xf32> to vector<128x128xf32>
    %11 = vector.broadcast %6 : vector<1x128xf32> to vector<128x128xf32>
    %12 = arith.mulf %10, %11 : vector<128x128xf32>
    %13 = arith.addf %9, %12 : vector<128x128xf32>
    %14 = vector.broadcast %2 : vector<128x1xf32> to vector<128x128xf32>
    %15 = arith.addf %13, %14 : vector<128x128xf32>
    %cst = arith.constant 0.000000e+00 : f32
    %16 = vector.broadcast %cst : f32 to vector<128x128xf32>
    %17 = arith.maximumf %15, %16 : vector<128x128xf32>
    %cst_12 = arith.constant dense<0.000000e+00> : vector<8x128xf32>
    %18 = tpu.matmul %3, %17, %cst_12 {dimension_numbers = #tpu.dot_dimension_numbers<[1], [0], [0], [1], [0, 0, 1, 1], [], []>} : vector<8x128xf32>, vector<128x128xf32>, vector<8x128xf32> -> vector<8x128xf32>
    %19 = vector.broadcast %4 : vector<8x1xf32> to vector<8x128xf32>
    %20 = arith.addf %18, %19 : vector<8x128xf32>
    %c0_13 = arith.constant 0 : index
    %c0_14 = arith.constant 0 : index
    %21 = vector.load %arg6[%c0_13, %c0_14] : memref<8x128xf32, #tpu.memory_space<vmem>>, vector<8x128xf32>
    tpu.vector_store %arg6[%c0_13, %c0_14], %20 {strides = array<i32>} : memref<8x128xf32, #tpu.memory_space<vmem>>, vector<8x128xf32>,
    return
  }
  func.func @transform_0(%arg0: i32) -> (i32, i32) {
    %c0_i32 = arith.constant 0 : i32
    %c0_i32_0 = arith.constant 0 : i32
    return %c0_i32, %arg0 : i32, i32
  }
  func.func @transform_1(%arg0: i32) -> (i32, i32) {
    %c0_i32 = arith.constant 0 : i32
    %c0_i32_0 = arith.constant 0 : i32
    %c0_i32_1 = arith.constant 0 : i32
    return %c0_i32, %c0_i32_0 : i32, i32
  }
  func.func @transform_2(%arg0: i32) -> (i32, i32) {
    %c0_i32 = arith.constant 0 : i32
    %c0_i32_0 = arith.constant 0 : i32
    %c0_i32_1 = arith.constant 0 : i32
    return %c0_i32, %c0_i32_0 : i32, i32
  }
  func.func @transform_3(%arg0: i32) -> (i32, i32) {
    %c0_i32 = arith.constant 0 : i32
    %c0_i32_0 = arith.constant 0 : i32
    %c0_i32_1 = arith.constant 0 : i32
    return %c0_i32, %c0_i32_0 : i32, i32
  }
  func.func @transform_4(%arg0: i32) -> (i32, i32) {
    %c0_i32 = arith.constant 0 : i32
    %c0_i32_0 = arith.constant 0 : i32
    %c0_i32_1 = arith.constant 0 : i32
    return %c0_i32, %c0_i32_0 : i32, i32
  }
  func.func @transform_5(%arg0: i32) -> (i32, i32) {
    %c0_i32 = arith.constant 0 : i32
    %c0_i32_0 = arith.constant 0 : i32
    return %c0_i32, %arg0 : i32, i32
  }
}

</mosaic_0001>

<bundles_post_ra>
// kernel: tpu_custom_call.1
= control target key start
LH: loop header
LB: loop body
LE: loop exit
PB: predicated region body
PF: predicated region fallthrough
CT: control target
= control target key end

     0   :  { %v559_v2 = vmov 1   ;;  %v560_v3 = vmov 0   ;;  %s793_s0 = inlined_call_operand.vmem [shape: f32[2,128], index: 0, kind: input, shape index: {}]   ;;  %s794_s1 = inlined_call_operand.vmem [shape: f32[128,2], index: 1, kind: input, shape index: {}]   ;;  %s795_s2 = inlined_call_operand.vmem [shape: f32[128,1], index: 2, kind: input, shape index: {}]   ;;  %s796_s3 = inlined_call_operand.vmem [shape: f32[8,128], index: 3, kind: input, shape index: {}]   ;;  %s797_s4 = inlined_call_operand.vmem [shape: f32[8,1], index: 4, kind: input, shape index: {}]   ;;  %s798_s5 = inlined_call_operand.hbm [shape: f32[8,128], index: 5, kind: output, shape index: {}]  }
   0x1   :  { %v36_v0 = vld [vmem:[%s794_s1 + $0x78] sm:$0xff]  ;;  %v35_v1 = vld [vmem:[%s794_s1 + $0x70] sm:$0xff]  ;;  %518 = vset.pattern.permute.xlu0 %v559_v2  ;;  %519 = vset.pattern.permute.xlu1 %v560_v3  ;;  %v34_v4 = vld [vmem:[%s794_s1 + $0x68] sm:$0xff] }
   0x2   :  { %218 = vperm.xlu0 %518, %v36_v0   ;;  %129 = vperm.xlu1 %519, %v35_v1   ;;  %v31_v5 = vld [vmem:[%s794_s1 + $0x50] sm:$0xff]  ;;  %v30_v6 = vld [vmem:[%s794_s1 + $0x48] sm:$0xff] }
   0x6   :  { %520 = vset.pattern.permute.xlu1 %v559_v2  ;;  %210 = vperm.xlu0 %518, %v34_v4  }
   0x7   :  { %214 = vperm.xlu1 %520, %v35_v1  }
   0xa   :  { %198 = vperm.xlu0 %518, %v31_v5  }
   0xb   :  { %521 = vset.pattern.permute.xlu1 %v560_v3 }
   0xc   :  { %10 = vsyncpa [#allocation3], 0  ;;  %124 = vperm.xlu1 %521, %v34_v4   ;;  %v52_v7 = vld [vmem:[%s795_s2 + $0x78] sm:$0xff]  ;;  %v27_v8 = vld [vmem:[%s794_s1 + $0x30] sm:$0xff]  ;;  %v561_v16 = vmov 0.0   ;;  %vm562_vm0 = vmmov 0  }
   0xd   :  { %v33_v9 = vld [vmem:[%s794_s1 + $0x60] sm:$0xff]  ;;  %v26_v10 = vld [vmem:[%s794_s1 + $0x28] sm:$0xff]  ;;  %v51_v11 = vld [vmem:[%s795_s2 + $0x70] sm:$0xff]  ;;  %478 = vmatprep.subr.mxu0 %v561_v16  ;;  %510 = vmatprep.mubr.msk.f32.mxu0 %vm562_vm0, %v561_v16  ;;  %s563_s11 = smov [#allocation2]  }
   0xe   :  { %194 = vperm.xlu0 %518, %v30_v6   ;;  %v632_v12 = vld [vmem:[%s794_s1 + $0x10] sm:$0xff]  ;;  %v22_v13 = vld [vmem:[%s794_s1 + $0x8] sm:$0xff]  ;;  %v32_v14 = vld [vmem:[%s794_s1 + $0x58] sm:$0xff]  ;;  %s451_s12 = sshll.u32 %s563_s11, 4  ;;  %s452_s12 = int_to_ptr.vmem [resolvable:$true] %s451_s12 }
   0xf   :  { %v49_v15 = vld [vmem:[%s795_s2 + $0x60] sm:$0xff]  ;;  %v50_v17 = vld [vmem:[%s795_s2 + $0x68] sm:$0xff]  ;;  %v48_v18 = vld [vmem:[%s795_s2 + $0x58] sm:$0xff]  ;;  %s537_s13 = scalar_lea.vmem %s452_s12, 128  ;;  %p542_p1 = scmp.lt.s32.totalorder %s452_s12, %s452_s12 }
  0x10   :  { %334 = vperm.xlu1 %521, %v52_v7   ;;  %v29_v19 = vld [vmem:[%s794_s1 + $0x40] sm:$0xff]  ;;  %v28_v20 = vld [vmem:[%s794_s1 + $0x38] sm:$0xff]  ;;  %v47_v21 = vld [vmem:[%s795_s2 + $0x50] sm:$0xff]  ;;  %p538_p0 = scmp.ne.s32.totalorder %s452_s12, %s537_s13  ;;  %p543_p2 = scmp.lt.s32.totalorder %s537_s13, %s537_s13 }
  0x11   :  { %v46_v22 = vld [vmem:[%s795_s2 + $0x48] sm:$0xff]  ;;  %v25_v23 = vld [vmem:[%s794_s1 + $0x20] sm:$0xff]  ;;  %v24_v24 = vld [vmem:[%s794_s1 + $0x18] sm:$0xff] }
  0x12   :  { %182 = vperm.xlu0 %518, %v27_v8   ;;  %v42_v25 = vld [vmem:[%s795_s2 + $0x28] sm:$0xff]  ;;  %v45_v26 = vld [vmem:[%s795_s2 + $0x40] sm:$0xff]  ;;  %v44_v29 = vld [vmem:[%s795_s2 + $0x38] sm:$0xff]  ;;  %p544_p3 = por %p543_p2, %p542_p1 }
  0x13   :  { %v21_v27 = vld [vmem:[%s794_s1] sm:$0xff]  ;;  %v38_v28 = vld [vmem:[%s795_s2 + $0x8] sm:$0xff]  ;;  %v43_v31 = vld [vmem:[%s795_s2 + $0x30] sm:$0xff] }
  0x14   :  { %522 = vset.pattern.permute.xlu1 %v559_v2  ;;  %v54_v30 = vld [vmem:[%s797_s4] sm:$0xff]  ;;  %v40_v33 = vld [vmem:[%s795_s2 + $0x18] sm:$0xff]  ;;  %v39_v34 = vld [vmem:[%s795_s2 + $0x10] sm:$0xff]  ;;  %p545_p4 = pnand %p544_p3, %p538_p0 }
  0x15   :  { %206 = vperm.xlu1 %522, %v33_v9   ;;  %v41_v32 = vld [vmem:[%s795_s2 + $0x20] sm:$0xff] }
  0x16   :  { %178 = vperm.xlu0 %518, %v26_v10   ;;  %v37_v35 = vld [vmem:[%s795_s2] sm:$0xff] }
  0x17   :  { %v729_v50 = vld [vmem:[%s793_s0 + $0x1] ss:$0 sm:$0xff]  ;;  %v734_v52 = vld [vmem:[%s793_s0] ss:$0 sm:$0xff] }
  0x19   :  { %523 = vset.pattern.permute.xlu1 %v560_v3 }
  0x1a   :  { %329 = vperm.xlu1 %523, %v51_v11   ;;  %166 = vperm.xlu0 %518, %v632_v12  }
  0x1e   :  { %524 = vset.pattern.permute.xlu1 %v559_v2  ;;  %162 = vperm.xlu0 %518, %v22_v13  }
  0x1f   :  { %202 = vperm.xlu1 %524, %v32_v14  }
  0x22   :  { %534 = vset.pattern.permute.xlu0 %v560_v3 }
  0x23   :  { %525 = vset.pattern.permute.xlu1 %v560_v3  ;;  %134 = vperm.xlu0 %534, %v36_v0  }
  0x24   :  { %109 = vperm.xlu1 %525, %v31_v5  }
  0x27   :  { %119 = vperm.xlu0 %534, %v33_v9  }
  0x28   :  { %319 = vperm.xlu1 %525, %v49_v15  }
  0x2b   :  { %114 = vperm.xlu0 %534, %v32_v14  }
  0x2c   :  { %104 = vperm.xlu1 %525, %v30_v6  }
  0x2f   :  { %324 = vperm.xlu0 %534, %v50_v17  }
  0x30   :  { %314 = vperm.xlu1 %525, %v48_v18  }
  0x33   :  { %99 = vperm.xlu0 %534, %v29_v19  }
  0x34   :  { %526 = vset.pattern.permute.xlu1 %v559_v2 }
  0x35   :  { %190 = vperm.xlu1 %526, %v29_v19  }
  0x37   :  { %94 = vperm.xlu0 %534, %v28_v20  }
  0x39   :  { %527 = vset.pattern.permute.xlu1 %v560_v3 }
  0x3a   :  { %309 = vperm.xlu1 %527, %v47_v21  }
  0x3b   :  { %304 = vperm.xlu0 %534, %v46_v22  }
  0x3e   :  { %528 = vset.pattern.permute.xlu1 %v559_v2 }
  0x3f   :  { %186 = vperm.xlu1 %528, %v28_v20   ;;  %79 = vperm.xlu0 %534, %v25_v23  }
  0x43   :  { %529 = vset.pattern.permute.xlu1 %v560_v3  ;;  %74 = vperm.xlu0 %534, %v24_v24  }
  0x44   :  { %89 = vperm.xlu1 %529, %v27_v8  }
  0x47   :  { %284 = vperm.xlu0 %534, %v42_v25  }
  0x48   :  { %299 = vperm.xlu1 %529, %v45_v26  }
  0x4b   :  { %59 = vperm.xlu0 %534, %v21_v27  }
  0x4c   :  { %84 = vperm.xlu1 %529, %v26_v10  }
  0x4f   :  { %264 = vperm.xlu0 %534, %v38_v28  }
  0x50   :  { %294 = vperm.xlu1 %529, %v44_v29  }
  0x53   :  { %371 = vperm.xlu0 %534, %v54_v30  }
  0x54   :  { %530 = vset.pattern.permute.xlu1 %v559_v2 }
  0x55   :  { %174 = vperm.xlu1 %530, %v25_v23  }
  0x59   :  { %531 = vset.pattern.permute.xlu1 %v560_v3 }
  0x5a   :  { %289 = vperm.xlu1 %531, %v43_v31  }
  0x5e   :  { %532 = vset.pattern.permute.xlu1 %v559_v2 }
  0x5f   :  { %170 = vperm.xlu1 %532, %v24_v24  }
  0x63   :  { %533 = vset.pattern.permute.xlu1 %v560_v3 }
  0x64   :  { %69 = vperm.xlu1 %533, %v632_v12  }
  0x68   :  { %279 = vperm.xlu1 %533, %v41_v32  }
  0x6c   :  { %64 = vperm.xlu1 %533, %v22_v13  }
  0x70   :  { %274 = vperm.xlu1 %533, %v40_v33  }
  0x74   :  { %535 = vset.pattern.permute.xlu1 %v559_v2 }
  0x75   :  { %158 = vperm.xlu1 %535, %v21_v27  }
  0x79   :  { %536 = vset.pattern.permute.xlu1 %v560_v3 }
  0x7a   :  { %269 = vperm.xlu1 %536, %v39_v34  }
  0x7d   :  { %v130_v36 = vpop.permute.xlu1 %129  ;;  %v219_v37 = vpop.permute.xlu0 %218 }
  0x7e   :  { %259 = vperm.xlu1 %536, %v37_v35   ;;  %v240_v53 = vmul.f32 %v729_v50, %v219_v37  ;;  %v155_v56 = vmul.f32 %v734_v52, %v130_v36 }
  0x81   :  { %v211_v38 = vpop.permute.xlu0 %210 }
  0x82   :  { %v215_v39 = vpop.permute.xlu1 %214  ;;  %v238_v2 = vmul.f32 %v729_v50, %v211_v38 }
  0x83   :  { %v239_v54 = vmul.f32 %v729_v50, %v215_v39 }
  0x85   :  { %v199_v40 = vpop.permute.xlu0 %198  ;;  %v255_v59 = vadd.f32 %v239_v54, %v155_v56 }
  0x86   :  { %v235_v23 = vmul.f32 %v729_v50, %v199_v40 }
  0x87   :  { %v125_v41 = vpop.permute.xlu1 %124 }
  0x88   :  { %v154_v3 = vmul.f32 %v734_v52, %v125_v41 }
  0x89   :  { %v195_v42 = vpop.permute.xlu0 %194 }
  0x8a   :  { %v254_v12 = vadd.f32 %v238_v2, %v154_v3  ;;  %v234_v26 = vmul.f32 %v729_v50, %v195_v42 }
  0x8b   :  { %v335_v43 = vpop.permute.xlu1 %334 }
  0x8d   :  { %v718_v44 = vpop.permute.xlu0 %182 }
  0x90   :  { %v207_v45 = vpop.permute.xlu1 %206 }
  0x91   :  { %v720_v46 = vpop.permute.xlu0 %178  ;;  %v237_v4 = vmul.f32 %v729_v50, %v207_v45 }
  0x95   :  { %v330_v47 = vpop.permute.xlu1 %329  ;;  %v722_v48 = vpop.permute.xlu0 %166 }
  0x96   :  { %v351_v62 = vadd.f32 %v330_v47, %v255_v59 }
  0x98   :  { %v367_v7 = vmax.f32 %v351_v62, 0.0  ;;  %v230_v62 = vmul.f32 %v729_v50, %v720_v46 }
  0x99   :  { %v724_v49 = vpop.permute.xlu0 %162 }
  0x9a   :  { %v203_v51 = vpop.permute.xlu1 %202 }
  0x9b   :  { %v236_v8 = vmul.f32 %v729_v50, %v203_v51 }
  0x9e   :  { %v135_v55 = vpop.permute.xlu0 %134 }
  0x9f   :  { %v156_v57 = vmul.f32 %v734_v52, %v135_v55  ;;  %v110_v58 = vpop.permute.xlu1 %109 }
  0xa0   :  { %v151_v24 = vmul.f32 %v734_v52, %v110_v58 }
  0xa1   :  { %v256_v60 = vadd.f32 %v240_v53, %v156_v57 }
  0xa2   :  { %v120_v61 = vpop.permute.xlu0 %119  ;;  %v251_v30 = vadd.f32 %v235_v23, %v151_v24 }
  0xa3   :  { %v153_v63 = vmul.f32 %v734_v52, %v120_v61  ;;  %v320_v0 = vpop.permute.xlu1 %319  ;;  %v352_v1 = vadd.f32 %v335_v43, %v256_v60 }
  0xa5   :  { %v368_v5 = vmax.f32 %v352_v1, 0.0  ;;  %v253_v9 = vadd.f32 %v237_v4, %v153_v63  ;;  %v231_v1 = vmul.f32 %v729_v50, %v718_v44 }
  0xa6   :  { %v115_v6 = vpop.permute.xlu0 %114 }
  0xa7   :  { %v152_v10 = vmul.f32 %v734_v52, %v115_v6  ;;  %v105_v11 = vpop.permute.xlu1 %104  ;;  %479 = vmatpush3.msra.mxu0 %v368_v5  ;;  %v349_v15 = vadd.f32 %v320_v0, %v253_v9 }
  0xa8   :  { %480 = vmatprep.subr.mxu0 %v561_v16  ;;  %v150_v27 = vmul.f32 %v734_v52, %v105_v11 }
  0xa9   :  { %481 = vmatpush3.msra.mxu0 %v367_v7  ;;  %v252_v13 = vadd.f32 %v236_v8, %v152_v10  ;;  %v365_v22 = vmax.f32 %v349_v15, 0.0 }
  0xaa   :  { %v325_v14 = vpop.permute.xlu0 %324  ;;  %482 = vmatprep.subr.mxu0 %v561_v16  ;;  %v250_v32 = vadd.f32 %v234_v26, %v150_v27  ;;  %v226_v26 = vmul.f32 %v729_v50, %v724_v49 }
  0xab   :  { %v350_v17 = vadd.f32 %v325_v14, %v254_v12  ;;  %v315_v18 = vpop.permute.xlu1 %314 }
  0xac   :  { %v348_v20 = vadd.f32 %v315_v18, %v252_v13 }
  0xad   :  { %v366_v19 = vmax.f32 %v350_v17, 0.0 }
  0xae   :  { %v100_v21 = vpop.permute.xlu0 %99  ;;  %v364_v28 = vmax.f32 %v348_v20, 0.0 }
  0xaf   :  { %483 = vmatpush3.msra.mxu0 %v366_v19  ;;  %v149_v39 = vmul.f32 %v734_v52, %v100_v21 }
  0xb0   :  { %v191_v25 = vpop.permute.xlu1 %190  ;;  %484 = vmatprep.subr.mxu0 %v561_v16 }
  0xb1   :  { %485 = vmatpush3.msra.mxu0 %v365_v22  ;;  %v233_v40 = vmul.f32 %v729_v50, %v191_v25 }
  0xb2   :  { %486 = vmatprep.subr.mxu0 %v561_v16  ;;  %v95_v29 = vpop.permute.xlu0 %94 }
  0xb3   :  { %487 = vmatpush3.msra.mxu0 %v364_v28  ;;  %v249_v42 = vadd.f32 %v233_v40, %v149_v39  ;;  %v148_v47 = vmul.f32 %v734_v52, %v95_v29  ;;  %v227_v29 = vmul.f32 %v729_v50, %v722_v48  ;;  %v53_v48 = vld [vmem:[%s796_s3] sm:$0xff] }
  0xb4   :  { %488 = vmatprep.subr.mxu0 %v561_v16 }
  0xb5   :  { %v310_v31 = vpop.permute.xlu1 %309 }
  0xb6   :  { %v347_v33 = vadd.f32 %v310_v31, %v251_v30  ;;  %v305_v34 = vpop.permute.xlu0 %304 }
  0xb7   :  { %v346_v35 = vadd.f32 %v305_v34, %v250_v32 }
  0xb8   :  { %v363_v36 = vmax.f32 %v347_v33, 0.0 }
  0xb9   :  { %v362_v37 = vmax.f32 %v346_v35, 0.0 }
  0xba   :  { %v187_v38 = vpop.permute.xlu1 %186  ;;  %489 = vmatpush3.msra.mxu0 %v363_v36  ;;  %v80_v55 = vpop.permute.xlu0 %79 }
  0xbb   :  { %490 = vmatprep.subr.mxu0 %v561_v16  ;;  %v232_v51 = vmul.f32 %v729_v50, %v187_v38  ;;  %v145_v44 = vmul.f32 %v734_v52, %v80_v55 }
  0xbc   :  { %491 = vmatpush3.msra.mxu0 %v362_v37 }
  0xbd   :  { %492 = vmatprep.subr.mxu0 %v561_v16  ;;  %v248_v56 = vadd.f32 %v232_v51, %v148_v47 }
  0xbe   :  { %v75_v61 = vpop.permute.xlu0 %74 }
  0xbf   :  { %v90_v41 = vpop.permute.xlu1 %89  ;;  %v144_v19 = vmul.f32 %v734_v52, %v75_v61 }
  0xc0   :  { %v147_v63 = vmul.f32 %v734_v52, %v90_v41 }
  0xc2   :  { %v247_v3 = vadd.f32 %v231_v1, %v147_v63  ;;  %v285_v4 = vpop.permute.xlu0 %284 }
  0xc3   :  { %v300_v43 = vpop.permute.xlu1 %299 }
  0xc4   :  { %v345_v45 = vadd.f32 %v300_v43, %v249_v42 }
  0xc6   :  { %v361_v53 = vmax.f32 %v345_v45, 0.0  ;;  %v60_v25 = vpop.permute.xlu0 %59 }
  0xc7   :  { %v85_v54 = vpop.permute.xlu1 %84  ;;  %v141_v35 = vmul.f32 %v734_v52, %v60_v25 }
  0xc8   :  { %493 = vmatpush3.msra.mxu0 %v361_v53  ;;  %v146_v59 = vmul.f32 %v734_v52, %v85_v54 }
  0xc9   :  { %494 = vmatprep.subr.mxu0 %v561_v16 }
  0xca   :  { %v246_v2 = vadd.f32 %v230_v62, %v146_v59  ;;  %v265_v33 = vpop.permute.xlu0 %264 }
  0xcb   :  { %v295_v57 = vpop.permute.xlu1 %294 }
  0xcc   :  { %v344_v58 = vadd.f32 %v295_v57, %v248_v56  ;;  %v342_v7 = vadd.f32 %v285_v4, %v246_v2 }
  0xce   :  { %v360_v60 = vmax.f32 %v344_v58, 0.0  ;;  %v358_v10 = vmax.f32 %v342_v7, 0.0 }
  0xd0   :  { %v175_v0 = vpop.permute.xlu1 %174  ;;  %495 = vmatpush3.msra.mxu0 %v360_v60 }
  0xd1   :  { %496 = vmatprep.subr.mxu0 %v561_v16  ;;  %v229_v46 = vmul.f32 %v729_v50, %v175_v0 }
  0xd3   :  { %v245_v12 = vadd.f32 %v229_v46, %v145_v44 }
  0xd5   :  { %v290_v5 = vpop.permute.xlu1 %289 }
  0xd6   :  { %v343_v6 = vadd.f32 %v290_v5, %v247_v3 }
  0xd8   :  { %v359_v8 = vmax.f32 %v343_v6, 0.0 }
  0xda   :  { %v171_v9 = vpop.permute.xlu1 %170  ;;  %497 = vmatpush3.msra.mxu0 %v359_v8 }
  0xdb   :  { %498 = vmatprep.subr.mxu0 %v561_v16  ;;  %v228_v15 = vmul.f32 %v729_v50, %v171_v9 }
  0xdc   :  { %499 = vmatpush3.msra.mxu0 %v358_v10 }
  0xdd   :  { %500 = vmatprep.subr.mxu0 %v561_v16  ;;  %v244_v20 = vadd.f32 %v228_v15, %v144_v19 }
  0xdf   :  { %v70_v11 = vpop.permute.xlu1 %69 }
  0xe0   :  { %v143_v27 = vmul.f32 %v734_v52, %v70_v11 }
  0xe2   :  { %v243_v32 = vadd.f32 %v227_v29, %v143_v27 }
  0xe3   :  { %v280_v13 = vpop.permute.xlu1 %279 }
  0xe4   :  { %v341_v14 = vadd.f32 %v280_v13, %v245_v12 }
  0xe6   :  { %v357_v17 = vmax.f32 %v341_v14, 0.0 }
  0xe7   :  { %v65_v18 = vpop.permute.xlu1 %64 }
  0xe8   :  { %501 = vmatpush3.msra.mxu0 %v357_v17  ;;  %v142_v23 = vmul.f32 %v734_v52, %v65_v18 }
  0xe9   :  { %502 = vmatprep.subr.mxu0 %v561_v16 }
  0xea   :  { %v242_v30 = vadd.f32 %v226_v26, %v142_v23 }
  0xeb   :  { %v275_v21 = vpop.permute.xlu1 %274 }
  0xec   :  { %v340_v22 = vadd.f32 %v275_v21, %v244_v20  ;;  %v338_v37 = vadd.f32 %v265_v33, %v242_v30 }
  0xee   :  { %v356_v24 = vmax.f32 %v340_v22, 0.0  ;;  %v354_v41 = vmax.f32 %v338_v37, 0.0 }
  0xf0   :  { %503 = vmatpush3.msra.mxu0 %v356_v24  ;;  %v159_v28 = vpop.permute.xlu1 %158 }
  0xf1   :  { %504 = vmatprep.subr.mxu0 %v561_v16  ;;  %v225_v31 = vmul.f32 %v729_v50, %v159_v28  ;;  %v372_v50 = vpop.permute.xlu0 %371 }
  0xf3   :  { %v241_v38 = vadd.f32 %v225_v31, %v141_v35 }
  0xf5   :  { %v270_v34 = vpop.permute.xlu1 %269 }
  0xf6   :  { %v339_v36 = vadd.f32 %v270_v34, %v243_v32 }
  0xf8   :  { %v355_v49 = vmax.f32 %v339_v36, 0.0 }
  0xf9   :  { %v260_v39 = vpop.permute.xlu1 %259 }
  0xfa   :  { %v337_v40 = vadd.f32 %v260_v39, %v241_v38  ;;  %505 = vmatpush3.msra.mxu0 %v355_v49 }
  0xfb   :  { %506 = vmatprep.subr.mxu0 %v561_v16 }
  0xfc   :  { %v353_v42 = vmax.f32 %v337_v40, 0.0  ;;  %507 = vmatpush3.msra.mxu0 %v354_v41 }
  0xfd   :  { %508 = vmatprep.subr.mxu0 %v561_v16 }
  0xfe   :  { %509 = vmatpush3.msra.mxu0 %v353_v42 }
  0xff   :  { %511 = vmatmul.mubr.f32.vlgmr.msra.gmra.mxu0 %v53_v48 }
 0x1bf   :  { %v440_v52 = vpop.f32.mrf.mxu0 }
 0x1c0   :  { %v441_v43 = vadd.f32 %v440_v52, %v372_v50 }
 0x1c1   :  { %v512_v45 = vpop.f32.mrf.mxu0 }
 0x1c2   :  { %444 = vst [vmem:[#allocation2] sm:$0xff] %v441_v43 }
 0x1c3   :  { %548 = shalt.err (!%p545_p4)
}
 0x1c4   :  { %454 = dma.vmem_to_hbm [thread:$0]  %s452_s12, 128, %s798_s5, [#allocation3]  }
 0x1c5   :  { %557 = dma.done.wait [#allocation3], 128  }
 0x1c6   :  { %558 = vsyncadd [#allocation3], 4294967168 }
 0x1c7   :  { %458 = vsyncpa [#allocation3], 1 }

</bundles_post_ra>
